<compile_context>
chip_gen: v7x
topology: tpu7x:2x2x1
jax: 0.10.0
libtpu: 0.0.40
codegen_flags: <defaults>
</compile_context>

<pallas_src>
import jax
import jax.numpy as jnp
from jax.experimental import pallas as pl
from jax.experimental.pallas import tpu as pltpu

_MAX_TILE_N = 2048        # upper bound on batch-tile rows
_TILE_ALIGN = 16          # bf16 sublane tile is (16, 128)
_VPU_FC1_MAX_D = 16       # below this, fc1 runs on the VPU instead of the MXU
_VMEM_TILE_BUDGET = 40 << 20   # conservative tiling budget (fits v7x's 64 MiB)


# --------------------------------------------------------------------------
# Fused kernel:  fc1 (folded) -> [sigmoid -> LocallyConnected]* -> squeeze
# --------------------------------------------------------------------------
def _make_mlp_kernel(d, m1, lc_shapes, vpu_fc1):
    """lc_shapes: tuple of (m_in, m_out) per LocallyConnected layer."""
    num_lc = len(lc_shapes)

    def kernel(x_ref, w1_ref, b1_ref, *rest):
        o_ref = rest[-1]
        lc_refs = rest[:-1]                       # 2 * num_lc refs (w, b per layer)

        # ---- fc1 (pos - neg folded) -> per-m slabs hs[m] of shape [tn, d] ----
        if vpu_fc1:
            # Tiny d: d broadcast FMAs on the VPU; no MXU push/pop latency.
            xf = x_ref[...].astype(jnp.float32)             # [tn, d]
            xcols = [xf[:, j:j + 1] for j in range(d)]      # sliced once, reused
            hs = []
            for m in range(m1):                             # small, unrolled
                wm = w1_ref[m].astype(jnp.float32)          # [d, d]  (in_j, out_j)
                acc = b1_ref[m].astype(jnp.float32)         # [1, d]
                for j in range(d):
                    acc = acc + xcols[j] * wm[j:j + 1, :]
                hs.append(acc)                              # [tn, d]
        else:
            # One bf16 MXU matmul; columns laid out as col = m*d + j.
            h = jnp.dot(x_ref[...], w1_ref[...],
                        preferred_element_type=jnp.float32)
            h = h + b1_ref[...].astype(jnp.float32)         # [tn, m1*d]
            hs = [h[:, m * d:(m + 1) * d] for m in range(m1)]

        # ---- LocallyConnected stack on per-m slabs (pure VPU FMAs + EUP) ----
        m_in = m1
        for l in range(num_lc):
            m_out = lc_shapes[l][1]
            wt = lc_refs[2 * l][...].astype(jnp.float32)      # [m_in*m_out, d]
            bt = lc_refs[2 * l + 1][...].astype(jnp.float32)  # [m_out, d]

            ss = [jax.nn.sigmoid(h_m) for h_m in hs]          # sigmoid once per slab
            new_hs = []
            for k in range(m_out):                            # small, unrolled
                acc = bt[k:k + 1, :]                          # [1, d] broadcasts
                for m in range(m_in):
                    acc = acc + ss[m] * wt[m * m_out + k:m * m_out + k + 1, :]
                new_hs.append(acc)                            # [tn, d]
            hs = new_hs
            m_in = m_out

        # dims[-1] == 1 => single [tn, d] slab: squeeze already done, lane-dense.
        o_ref[...] = hs[0].astype(o_ref.dtype)

    return kernel


# --------------------------------------------------------------------------
# One-time parameter preparation (fold pos/neg, re-order lanes, cast to bf16)
# --------------------------------------------------------------------------
def prepare_pallas_params(params, dims):
    d, m1 = dims[0], dims[1]
    vpu_fc1 = d <= _VPU_FC1_MAX_D

    wfold = params["fc1_pos_w"] - params["fc1_neg_w"]          # [d*m1, d], row r = j*m1 + m
    bfold = params["fc1_pos_b"] - params["fc1_neg_b"]          # [d*m1]
    wr = wfold.reshape(d, m1, d)                               # [j, m, i]
    br = bfold.reshape(d, m1)                                  # [j, m]

    if vpu_fc1:
        # w1[m, i, j] = wfold[j*m1+m, i]  (slab m is a leading-axis index)
        w1 = jnp.transpose(wr, (1, 2, 0)).astype(jnp.bfloat16)           # [m1, d, d]
        b1 = jnp.transpose(br, (1, 0)).reshape(m1, 1, d).astype(jnp.float32)
    else:
        # w1[i, m*d + j] = wfold[j*m1+m, i]  (d lane-dense, single MXU dot)
        w1 = (jnp.transpose(wr, (1, 0, 2)).reshape(m1 * d, d).T
              ).astype(jnp.bfloat16)                                     # [d, m1*d]
        b1 = jnp.transpose(br, (1, 0)).reshape(1, m1 * d).astype(jnp.float32)

    lc = []
    lc_shapes = []
    for (w, b) in params["fc2"]:
        m_in, m_out = w.shape[1], w.shape[2]
        # wt[m*m_out + k, j] = w[j, m, k];  bt[k, j] = b[j, k]
        wt = jnp.transpose(w, (1, 2, 0)).reshape(m_in * m_out, d).astype(jnp.bfloat16)
        bt = jnp.transpose(b, (1, 0)).astype(jnp.float32)                # [m_out, d]
        lc.append((wt, bt))
        lc_shapes.append((m_in, m_out))

    return {"w1": w1, "b1": b1, "lc": lc, "lc_shapes": tuple(lc_shapes),
            "vpu_fc1": vpu_fc1}


# --------------------------------------------------------------------------
# Tile selection: as big as the VMEM budget allows, >=2 balanced steps (v7x)
# --------------------------------------------------------------------------
def _choose_tile_n(n, per_row_bytes, weight_bytes):
    avail = max(_VMEM_TILE_BUDGET - 2 * weight_bytes, _TILE_ALIGN * per_row_bytes)
    cap = int(avail // max(per_row_bytes, 1))
    cap = max(_TILE_ALIGN, min(_MAX_TILE_N, (cap // _TILE_ALIGN) * _TILE_ALIGN))

    steps = -(-n // cap)
    if n >= 2 * _TILE_ALIGN:
        steps = max(steps, 2)          # keep both v7x TensorCores busy
        if steps % 2 == 1:
            steps += 1
    tile = -(-n // steps)
    tile = ((tile + _TILE_ALIGN - 1) // _TILE_ALIGN) * _TILE_ALIGN
    return max(_TILE_ALIGN, min(tile, cap))


# --------------------------------------------------------------------------
# Wrapper: n-tiled, fully fused forward
# --------------------------------------------------------------------------
def mlp_forward_pallas(x, prepared, dims):
    assert dims[-1] == 1
    n, d = x.shape
    m1 = dims[1]
    lc_shapes = prepared["lc_shapes"]
    vpu_fc1 = prepared["vpu_fc1"]

    flat_lc = []
    for (wt, bt) in prepared["lc"]:
        flat_lc += [wt, bt]
    weight_arrays = [prepared["w1"], prepared["b1"]] + flat_lc
    weight_bytes = sum(int(a.size) * a.dtype.itemsize for a in weight_arrays)

    # Per-row VMEM footprint: double-buffered bf16 x tile + f32 out tile +
    # (generous) f32 live slabs for hs/ss inside the kernel.
    max_width = max(dims[1:])
    act_per_row = 4 * d * (2 * max_width + 2)
    per_row = 2 * 2 * d + 2 * 4 * d + act_per_row

    tile_n = _choose_tile_n(n, per_row, weight_bytes)

    x_bf = x.astype(jnp.bfloat16)
    if n < tile_n:
        # Tiny batch: trivial pad so the single block is fully in-bounds.
        x_bf = jnp.pad(x_bf, ((0, tile_n - n), (0, 0)))
        n_rows = tile_n
    else:
        # Ragged final block: OOB rows are read as unspecified values (never
        # reduced across rows) and OOB writes are dropped.  No HBM pad copy.
        n_rows = n
    grid_n = -(-n_rows // tile_n)

    kernel = _make_mlp_kernel(d, m1, lc_shapes, vpu_fc1)

    w1_rank = prepared["w1"].ndim
    b1_rank = prepared["b1"].ndim
    in_specs = [
        pl.BlockSpec((tile_n, d), lambda i: (i, 0)),
        pl.BlockSpec(prepared["w1"].shape, lambda i, r=w1_rank: (0,) * r),
        pl.BlockSpec(prepared["b1"].shape, lambda i, r=b1_rank: (0,) * r),
    ]
    for (wt, bt) in prepared["lc"]:
        in_specs.append(pl.BlockSpec(wt.shape, lambda i: (0, 0)))
        in_specs.append(pl.BlockSpec(bt.shape, lambda i: (0, 0)))

    # Explicit VMEM limit: resident (double-buffered) weights + streamed tiles.
    est_need = 2 * weight_bytes + tile_n * per_row + (2 << 20)
    vmem_limit = int(min(56 << 20, max(32 << 20, est_need)))

    # Advisory cost estimate for the XLA scheduler.
    flops = 2 * n_rows * d * (m1 * d)
    trans = 0
    for (mi, mo) in lc_shapes:
        trans += n_rows * mi * d
        flops += 2 * n_rows * d * mi * mo
    bytes_accessed = int(x_bf.size) * 2 + weight_bytes + n_rows * d * 4

    out = pl.pallas_call(
        kernel,
        out_shape=jax.ShapeDtypeStruct((n_rows, d), jnp.float32),
        grid=(grid_n,),
        in_specs=in_specs,
        out_specs=pl.BlockSpec((tile_n, d), lambda i: (i, 0)),
        compiler_params=pltpu.CompilerParams(
            dimension_semantics=("parallel",),
            vmem_limit_bytes=vmem_limit),
        cost_estimate=pl.CostEstimate(
            flops=int(flops), transcendentals=int(trans),
            bytes_accessed=int(bytes_accessed)),
    )(x_bf, prepared["w1"], prepared["b1"], *flat_lc)

    return out[:n] if n_rows != n else out


# --------------------------------------------------------------------------
# Deterministic parameter init (mirrors PyTorch defaults) + pure-JAX reference
# --------------------------------------------------------------------------
def init_mlp_params(key, dims):
    d, m1 = dims[0], dims[1]
    params = {}
    bound_fc1 = 1.0 / jnp.sqrt(jnp.float32(d))          # nn.Linear default
    k_wp, k_bp, k_wn, k_bn, key = jax.random.split(key, 5)
    params["fc1_pos_w"] = jax.random.uniform(k_wp, (d * m1, d), jnp.float32,
                                             -bound_fc1, bound_fc1)
    params["fc1_pos_b"] = jax.random.uniform(k_bp, (d * m1,), jnp.float32,
                                             -bound_fc1, bound_fc1)
    params["fc1_neg_w"] = jax.random.uniform(k_wn, (d * m1, d), jnp.float32,
                                             -bound_fc1, bound_fc1)
    params["fc1_neg_b"] = jax.random.uniform(k_bn, (d * m1,), jnp.float32,
                                             -bound_fc1, bound_fc1)
    fc2 = []
    for l in range(len(dims) - 2):
        m_in, m_out = dims[l + 1], dims[l + 2]
        bound = jnp.sqrt(1.0 / jnp.float32(m_in))        # LocallyConnected.reset_parameters
        k_w, k_b, key = jax.random.split(key, 3)
        w = jax.random.uniform(k_w, (d, m_in, m_out), jnp.float32, -bound, bound)
        b = jax.random.uniform(k_b, (d, m_out), jnp.float32, -bound, bound)
        fc2.append((w, b))
    params["fc2"] = fc2
    return params


def mlp_reference(x, params, dims):
    d, m1 = dims[0], dims[1]
    y = (x @ params["fc1_pos_w"].T + params["fc1_pos_b"]) \
        - (x @ params["fc1_neg_w"].T + params["fc1_neg_b"])
    h = y.reshape(-1, d, m1)
    for (w, b) in params["fc2"]:
        s = jax.nn.sigmoid(h)
        h = jnp.einsum("njm,jmk->njk", s, w) + b
    return h[:, :, 0]


if __name__ == "__main__":
    key = jax.random.PRNGKey(0)

    # Case 1: small shapes matching the module spec (d=4, m1=8, final 1).
    # Case 2: deeper stack + larger batch -> two balanced grid steps, ragged
    #         final block, multi-output LC path (VPU fc1 path, d<=16).
    # Case 3: d=32 -> exercises the bf16 MXU fc1 path (K=32, N=128).
    cases = [([4, 8, 1], 2), ([4, 8, 4, 1], 600), ([32, 4, 1], 96)]

    for dims, n in cases:
        key, k_params, k_x = jax.random.split(key, 3)
        params = init_mlp_params(k_params, dims)
        x = jax.random.normal(k_x, (n, dims[0]), jnp.float32)

        prepared = prepare_pallas_params(params, dims)
        out = jax.block_until_ready(mlp_forward_pallas(x, prepared, dims))
        ref = mlp_reference(x, params, dims)

        assert out.shape == (n, dims[0]), (out.shape, (n, dims[0]))
        # bf16 MXU/HBM operands -> relaxed tolerance vs. the f32 reference.
        assert jnp.allclose(out, ref, atol=2e-2, rtol=2e-2), (
            dims, n, float(jnp.max(jnp.abs(out - ref))))

    print("KERNEL_OK")
</pallas_src>

<mosaic_0001>
module attributes {stable_mosaic.version = 11 : i64} {
  func.func @kernel(%arg0: i32, %arg1: memref<16x4xbf16, #tpu.memory_space<vmem>>, %arg2: memref<8x4x4xbf16, #tpu.memory_space<vmem>>, %arg3: memref<8x1x4xf32, #tpu.memory_space<vmem>>, %arg4: memref<8x4xbf16, #tpu.memory_space<vmem>>, %arg5: memref<1x4xf32, #tpu.memory_space<vmem>>, %arg6: memref<16x4xf32, #tpu.memory_space<vmem>>) attributes {dimension_semantics = [#tpu.dimension_semantics<parallel>], iteration_bounds = array<i64: 1>, scalar_prefetch = 0 : i64, scratch_operands = 0 : i64, tpu.core_type = #tpu.core_type<tc>, window_params = [{transform_indices = @transform_0, window_bounds = array<i64: 16, 4>}, {pipeline_mode = #tpu.pipeline_mode<synchronous>, transform_indices = @transform_1, window_bounds = array<i64: 8, 4, 4>}, {pipeline_mode = #tpu.pipeline_mode<synchronous>, transform_indices = @transform_2, window_bounds = array<i64: 8, 1, 4>}, {pipeline_mode = #tpu.pipeline_mode<synchronous>, transform_indices = @transform_3, window_bounds = array<i64: 8, 4>}, {pipeline_mode = #tpu.pipeline_mode<synchronous>, transform_indices = @transform_4, window_bounds = array<i64: 1, 4>}, {transform_indices = @transform_5, window_bounds = array<i64: 16, 4>}]} {
    %c0 = arith.constant 0 : index
    %c0_0 = arith.constant 0 : index
    %0 = vector.load %arg1[%c0, %c0_0] : memref<16x4xbf16, #tpu.memory_space<vmem>>, vector<16x4xbf16>
    %1 = arith.extf %0 : vector<16x4xbf16> to vector<16x4xf32>
    %2 = vector.extract_strided_slice %1 {offsets = [0, 0], sizes = [16, 1], strides = [1, 1]} : vector<16x4xf32> to vector<16x1xf32>
    %3 = vector.extract_strided_slice %1 {offsets = [0, 1], sizes = [16, 1], strides = [1, 1]} : vector<16x4xf32> to vector<16x1xf32>
    %4 = vector.extract_strided_slice %1 {offsets = [0, 2], sizes = [16, 1], strides = [1, 1]} : vector<16x4xf32> to vector<16x1xf32>
    %5 = vector.extract_strided_slice %1 {offsets = [0, 3], sizes = [16, 1], strides = [1, 1]} : vector<16x4xf32> to vector<16x1xf32>
    %c0_1 = arith.constant 0 : index
    %c0_2 = arith.constant 0 : index
    %c0_3 = arith.constant 0 : index
    %6 = vector.load %arg2[%c0_1, %c0_2, %c0_3] : memref<8x4x4xbf16, #tpu.memory_space<vmem>>, vector<1x4x4xbf16>
    %7 = vector.shape_cast %6 : vector<1x4x4xbf16> to vector<4x4xbf16>
    %8 = arith.extf %7 : vector<4x4xbf16> to vector<4x4xf32>
    %c0_4 = arith.constant 0 : index
    %c0_5 = arith.constant 0 : index
    %c0_6 = arith.constant 0 : index
    %9 = vector.load %arg3[%c0_4, %c0_5, %c0_6] : memref<8x1x4xf32, #tpu.memory_space<vmem>>, vector<1x1x4xf32>
    %10 = vector.shape_cast %9 : vector<1x1x4xf32> to vector<1x4xf32>
    %11 = vector.extract_strided_slice %8 {offsets = [0, 0], sizes = [1, 4], strides = [1, 1]} : vector<4x4xf32> to vector<1x4xf32>
    %12 = vector.broadcast %2 : vector<16x1xf32> to vector<16x4xf32>
    %13 = vector.broadcast %11 : vector<1x4xf32> to vector<16x4xf32>
    %14 = arith.mulf %12, %13 : vector<16x4xf32>
    %15 = vector.broadcast %10 : vector<1x4xf32> to vector<16x4xf32>
    %16 = arith.addf %15, %14 : vector<16x4xf32>
    %17 = vector.extract_strided_slice %8 {offsets = [1, 0], sizes = [1, 4], strides = [1, 1]} : vector<4x4xf32> to vector<1x4xf32>
    %18 = vector.broadcast %3 : vector<16x1xf32> to vector<16x4xf32>
    %19 = vector.broadcast %17 : vector<1x4xf32> to vector<16x4xf32>
    %20 = arith.mulf %18, %19 : vector<16x4xf32>
    %21 = arith.addf %16, %20 : vector<16x4xf32>
    %22 = vector.extract_strided_slice %8 {offsets = [2, 0], sizes = [1, 4], strides = [1, 1]} : vector<4x4xf32> to vector<1x4xf32>
    %23 = vector.broadcast %4 : vector<16x1xf32> to vector<16x4xf32>
    %24 = vector.broadcast %22 : vector<1x4xf32> to vector<16x4xf32>
    %25 = arith.mulf %23, %24 : vector<16x4xf32>
    %26 = arith.addf %21, %25 : vector<16x4xf32>
    %27 = vector.extract_strided_slice %8 {offsets = [3, 0], sizes = [1, 4], strides = [1, 1]} : vector<4x4xf32> to vector<1x4xf32>
    %28 = vector.broadcast %5 : vector<16x1xf32> to vector<16x4xf32>
    %29 = vector.broadcast %27 : vector<1x4xf32> to vector<16x4xf32>
    %30 = arith.mulf %28, %29 : vector<16x4xf32>
    %31 = arith.addf %26, %30 : vector<16x4xf32>
    %c1 = arith.constant 1 : index
    %c0_7 = arith.constant 0 : index
    %c0_8 = arith.constant 0 : index
    %32 = vector.load %arg2[%c1, %c0_7, %c0_8] : memref<8x4x4xbf16, #tpu.memory_space<vmem>>, vector<1x4x4xbf16>
    %33 = vector.shape_cast %32 : vector<1x4x4xbf16> to vector<4x4xbf16>
    %34 = arith.extf %33 : vector<4x4xbf16> to vector<4x4xf32>
    %c1_9 = arith.constant 1 : index
    %c0_10 = arith.constant 0 : index
    %c0_11 = arith.constant 0 : index
    %35 = vector.load %arg3[%c1_9, %c0_10, %c0_11] : memref<8x1x4xf32, #tpu.memory_space<vmem>>, vector<1x1x4xf32>
    %36 = vector.shape_cast %35 : vector<1x1x4xf32> to vector<1x4xf32>
    %37 = vector.extract_strided_slice %34 {offsets = [0, 0], sizes = [1, 4], strides = [1, 1]} : vector<4x4xf32> to vector<1x4xf32>
    %38 = vector.broadcast %2 : vector<16x1xf32> to vector<16x4xf32>
    %39 = vector.broadcast %37 : vector<1x4xf32> to vector<16x4xf32>
    %40 = arith.mulf %38, %39 : vector<16x4xf32>
    %41 = vector.broadcast %36 : vector<1x4xf32> to vector<16x4xf32>
    %42 = arith.addf %41, %40 : vector<16x4xf32>
    %43 = vector.extract_strided_slice %34 {offsets = [1, 0], sizes = [1, 4], strides = [1, 1]} : vector<4x4xf32> to vector<1x4xf32>
    %44 = vector.broadcast %3 : vector<16x1xf32> to vector<16x4xf32>
    %45 = vector.broadcast %43 : vector<1x4xf32> to vector<16x4xf32>
    %46 = arith.mulf %44, %45 : vector<16x4xf32>
    %47 = arith.addf %42, %46 : vector<16x4xf32>
    %48 = vector.extract_strided_slice %34 {offsets = [2, 0], sizes = [1, 4], strides = [1, 1]} : vector<4x4xf32> to vector<1x4xf32>
    %49 = vector.broadcast %4 : vector<16x1xf32> to vector<16x4xf32>
    %50 = vector.broadcast %48 : vector<1x4xf32> to vector<16x4xf32>
    %51 = arith.mulf %49, %50 : vector<16x4xf32>
    %52 = arith.addf %47, %51 : vector<16x4xf32>
    %53 = vector.extract_strided_slice %34 {offsets = [3, 0], sizes = [1, 4], strides = [1, 1]} : vector<4x4xf32> to vector<1x4xf32>
    %54 = vector.broadcast %5 : vector<16x1xf32> to vector<16x4xf32>
    %55 = vector.broadcast %53 : vector<1x4xf32> to vector<16x4xf32>
    %56 = arith.mulf %54, %55 : vector<16x4xf32>
    %57 = arith.addf %52, %56 : vector<16x4xf32>
    %c2 = arith.constant 2 : index
    %c0_12 = arith.constant 0 : index
    %c0_13 = arith.constant 0 : index
    %58 = vector.load %arg2[%c2, %c0_12, %c0_13] : memref<8x4x4xbf16, #tpu.memory_space<vmem>>, vector<1x4x4xbf16>
    %59 = vector.shape_cast %58 : vector<1x4x4xbf16> to vector<4x4xbf16>
    %60 = arith.extf %59 : vector<4x4xbf16> to vector<4x4xf32>
    %c2_14 = arith.constant 2 : index
    %c0_15 = arith.constant 0 : index
    %c0_16 = arith.constant 0 : index
    %61 = vector.load %arg3[%c2_14, %c0_15, %c0_16] : memref<8x1x4xf32, #tpu.memory_space<vmem>>, vector<1x1x4xf32>
    %62 = vector.shape_cast %61 : vector<1x1x4xf32> to vector<1x4xf32>
    %63 = vector.extract_strided_slice %60 {offsets = [0, 0], sizes = [1, 4], strides = [1, 1]} : vector<4x4xf32> to vector<1x4xf32>
    %64 = vector.broadcast %2 : vector<16x1xf32> to vector<16x4xf32>
    %65 = vector.broadcast %63 : vector<1x4xf32> to vector<16x4xf32>
    %66 = arith.mulf %64, %65 : vector<16x4xf32>
    %67 = vector.broadcast %62 : vector<1x4xf32> to vector<16x4xf32>
    %68 = arith.addf %67, %66 : vector<16x4xf32>
    %69 = vector.extract_strided_slice %60 {offsets = [1, 0], sizes = [1, 4], strides = [1, 1]} : vector<4x4xf32> to vector<1x4xf32>
    %70 = vector.broadcast %3 : vector<16x1xf32> to vector<16x4xf32>
    %71 = vector.broadcast %69 : vector<1x4xf32> to vector<16x4xf32>
    %72 = arith.mulf %70, %71 : vector<16x4xf32>
    %73 = arith.addf %68, %72 : vector<16x4xf32>
    %74 = vector.extract_strided_slice %60 {offsets = [2, 0], sizes = [1, 4], strides = [1, 1]} : vector<4x4xf32> to vector<1x4xf32>
    %75 = vector.broadcast %4 : vector<16x1xf32> to vector<16x4xf32>
    %76 = vector.broadcast %74 : vector<1x4xf32> to vector<16x4xf32>
    %77 = arith.mulf %75, %76 : vector<16x4xf32>
    %78 = arith.addf %73, %77 : vector<16x4xf32>
    %79 = vector.extract_strided_slice %60 {offsets = [3, 0], sizes = [1, 4], strides = [1, 1]} : vector<4x4xf32> to vector<1x4xf32>
    %80 = vector.broadcast %5 : vector<16x1xf32> to vector<16x4xf32>
    %81 = vector.broadcast %79 : vector<1x4xf32> to vector<16x4xf32>
    %82 = arith.mulf %80, %81 : vector<16x4xf32>
    %83 = arith.addf %78, %82 : vector<16x4xf32>
    %c3 = arith.constant 3 : index
    %c0_17 = arith.constant 0 : index
    %c0_18 = arith.constant 0 : index
    %84 = vector.load %arg2[%c3, %c0_17, %c0_18] : memref<8x4x4xbf16, #tpu.memory_space<vmem>>, vector<1x4x4xbf16>
    %85 = vector.shape_cast %84 : vector<1x4x4xbf16> to vector<4x4xbf16>
    %86 = arith.extf %85 : vector<4x4xbf16> to vector<4x4xf32>
    %c3_19 = arith.constant 3 : index
    %c0_20 = arith.constant 0 : index
    %c0_21 = arith.constant 0 : index
    %87 = vector.load %arg3[%c3_19, %c0_20, %c0_21] : memref<8x1x4xf32, #tpu.memory_space<vmem>>, vector<1x1x4xf32>
    %88 = vector.shape_cast %87 : vector<1x1x4xf32> to vector<1x4xf32>
    %89 = vector.extract_strided_slice %86 {offsets = [0, 0], sizes = [1, 4], strides = [1, 1]} : vector<4x4xf32> to vector<1x4xf32>
    %90 = vector.broadcast %2 : vector<16x1xf32> to vector<16x4xf32>
    %91 = vector.broadcast %89 : vector<1x4xf32> to vector<16x4xf32>
    %92 = arith.mulf %90, %91 : vector<16x4xf32>
    %93 = vector.broadcast %88 : vector<1x4xf32> to vector<16x4xf32>
    %94 = arith.addf %93, %92 : vector<16x4xf32>
    %95 = vector.extract_strided_slice %86 {offsets = [1, 0], sizes = [1, 4], strides = [1, 1]} : vector<4x4xf32> to vector<1x4xf32>
    %96 = vector.broadcast %3 : vector<16x1xf32> to vector<16x4xf32>
    %97 = vector.broadcast %95 : vector<1x4xf32> to vector<16x4xf32>
    %98 = arith.mulf %96, %97 : vector<16x4xf32>
    %99 = arith.addf %94, %98 : vector<16x4xf32>
    %100 = vector.extract_strided_slice %86 {offsets = [2, 0], sizes = [1, 4], strides = [1, 1]} : vector<4x4xf32> to vector<1x4xf32>
    %101 = vector.broadcast %4 : vector<16x1xf32> to vector<16x4xf32>
    %102 = vector.broadcast %100 : vector<1x4xf32> to vector<16x4xf32>
    %103 = arith.mulf %101, %102 : vector<16x4xf32>
    %104 = arith.addf %99, %103 : vector<16x4xf32>
    %105 = vector.extract_strided_slice %86 {offsets = [3, 0], sizes = [1, 4], strides = [1, 1]} : vector<4x4xf32> to vector<1x4xf32>
    %106 = vector.broadcast %5 : vector<16x1xf32> to vector<16x4xf32>
    %107 = vector.broadcast %105 : vector<1x4xf32> to vector<16x4xf32>
    %108 = arith.mulf %106, %107 : vector<16x4xf32>
    %109 = arith.addf %104, %108 : vector<16x4xf32>
    %c4 = arith.constant 4 : index
    %c0_22 = arith.constant 0 : index
    %c0_23 = arith.constant 0 : index
    %110 = vector.load %arg2[%c4, %c0_22, %c0_23] : memref<8x4x4xbf16, #tpu.memory_space<vmem>>, vector<1x4x4xbf16>
    %111 = vector.shape_cast %110 : vector<1x4x4xbf16> to vector<4x4xbf16>
    %112 = arith.extf %111 : vector<4x4xbf16> to vector<4x4xf32>
    %c4_24 = arith.constant 4 : index
    %c0_25 = arith.constant 0 : index
    %c0_26 = arith.constant 0 : index
    %113 = vector.load %arg3[%c4_24, %c0_25, %c0_26] : memref<8x1x4xf32, #tpu.memory_space<vmem>>, vector<1x1x4xf32>
    %114 = vector.shape_cast %113 : vector<1x1x4xf32> to vector<1x4xf32>
    %115 = vector.extract_strided_slice %112 {offsets = [0, 0], sizes = [1, 4], strides = [1, 1]} : vector<4x4xf32> to vector<1x4xf32>
    %116 = vector.broadcast %2 : vector<16x1xf32> to vector<16x4xf32>
    %117 = vector.broadcast %115 : vector<1x4xf32> to vector<16x4xf32>
    %118 = arith.mulf %116, %117 : vector<16x4xf32>
    %119 = vector.broadcast %114 : vector<1x4xf32> to vector<16x4xf32>
    %120 = arith.addf %119, %118 : vector<16x4xf32>
    %121 = vector.extract_strided_slice %112 {offsets = [1, 0], sizes = [1, 4], strides = [1, 1]} : vector<4x4xf32> to vector<1x4xf32>
    %122 = vector.broadcast %3 : vector<16x1xf32> to vector<16x4xf32>
    %123 = vector.broadcast %121 : vector<1x4xf32> to vector<16x4xf32>
    %124 = arith.mulf %122, %123 : vector<16x4xf32>
    %125 = arith.addf %120, %124 : vector<16x4xf32>
    %126 = vector.extract_strided_slice %112 {offsets = [2, 0], sizes = [1, 4], strides = [1, 1]} : vector<4x4xf32> to vector<1x4xf32>
    %127 = vector.broadcast %4 : vector<16x1xf32> to vector<16x4xf32>
    %128 = vector.broadcast %126 : vector<1x4xf32> to vector<16x4xf32>
    %129 = arith.mulf %127, %128 : vector<16x4xf32>
    %130 = arith.addf %125, %129 : vector<16x4xf32>
    %131 = vector.extract_strided_slice %112 {offsets = [3, 0], sizes = [1, 4], strides = [1, 1]} : vector<4x4xf32> to vector<1x4xf32>
    %132 = vector.broadcast %5 : vector<16x1xf32> to vector<16x4xf32>
    %133 = vector.broadcast %131 : vector<1x4xf32> to vector<16x4xf32>
    %134 = arith.mulf %132, %133 : vector<16x4xf32>
    %135 = arith.addf %130, %134 : vector<16x4xf32>
    %c5 = arith.constant 5 : index
    %c0_27 = arith.constant 0 : index
    %c0_28 = arith.constant 0 : index
    %136 = vector.load %arg2[%c5, %c0_27, %c0_28] : memref<8x4x4xbf16, #tpu.memory_space<vmem>>, vector<1x4x4xbf16>
    %137 = vector.shape_cast %136 : vector<1x4x4xbf16> to vector<4x4xbf16>
    %138 = arith.extf %137 : vector<4x4xbf16> to vector<4x4xf32>
    %c5_29 = arith.constant 5 : index
    %c0_30 = arith.constant 0 : index
    %c0_31 = arith.constant 0 : index
    %139 = vector.load %arg3[%c5_29, %c0_30, %c0_31] : memref<8x1x4xf32, #tpu.memory_space<vmem>>, vector<1x1x4xf32>
    %140 = vector.shape_cast %139 : vector<1x1x4xf32> to vector<1x4xf32>
    %141 = vector.extract_strided_slice %138 {offsets = [0, 0], sizes = [1, 4], strides = [1, 1]} : vector<4x4xf32> to vector<1x4xf32>
    %142 = vector.broadcast %2 : vector<16x1xf32> to vector<16x4xf32>
    %143 = vector.broadcast %141 : vector<1x4xf32> to vector<16x4xf32>
    %144 = arith.mulf %142, %143 : vector<16x4xf32>
    %145 = vector.broadcast %140 : vector<1x4xf32> to vector<16x4xf32>
    %146 = arith.addf %145, %144 : vector<16x4xf32>
    %147 = vector.extract_strided_slice %138 {offsets = [1, 0], sizes = [1, 4], strides = [1, 1]} : vector<4x4xf32> to vector<1x4xf32>
    %148 = vector.broadcast %3 : vector<16x1xf32> to vector<16x4xf32>
    %149 = vector.broadcast %147 : vector<1x4xf32> to vector<16x4xf32>
    %150 = arith.mulf %148, %149 : vector<16x4xf32>
    %151 = arith.addf %146, %150 : vector<16x4xf32>
    %152 = vector.extract_strided_slice %138 {offsets = [2, 0], sizes = [1, 4], strides = [1, 1]} : vector<4x4xf32> to vector<1x4xf32>
    %153 = vector.broadcast %4 : vector<16x1xf32> to vector<16x4xf32>
    %154 = vector.broadcast %152 : vector<1x4xf32> to vector<16x4xf32>
    %155 = arith.mulf %153, %154 : vector<16x4xf32>
    %156 = arith.addf %151, %155 : vector<16x4xf32>
    %157 = vector.extract_strided_slice %138 {offsets = [3, 0], sizes = [1, 4], strides = [1, 1]} : vector<4x4xf32> to vector<1x4xf32>
    %158 = vector.broadcast %5 : vector<16x1xf32> to vector<16x4xf32>
    %159 = vector.broadcast %157 : vector<1x4xf32> to vector<16x4xf32>
    %160 = arith.mulf %158, %159 : vector<16x4xf32>
    %161 = arith.addf %156, %160 : vector<16x4xf32>
    %c6 = arith.constant 6 : index
    %c0_32 = arith.constant 0 : index
    %c0_33 = arith.constant 0 : index
    %162 = vector.load %arg2[%c6, %c0_32, %c0_33] : memref<8x4x4xbf16, #tpu.memory_space<vmem>>, vector<1x4x4xbf16>
    %163 = vector.shape_cast %162 : vector<1x4x4xbf16> to vector<4x4xbf16>
    %164 = arith.extf %163 : vector<4x4xbf16> to vector<4x4xf32>
    %c6_34 = arith.constant 6 : index
    %c0_35 = arith.constant 0 : index
    %c0_36 = arith.constant 0 : index
    %165 = vector.load %arg3[%c6_34, %c0_35, %c0_36] : memref<8x1x4xf32, #tpu.memory_space<vmem>>, vector<1x1x4xf32>
    %166 = vector.shape_cast %165 : vector<1x1x4xf32> to vector<1x4xf32>
    %167 = vector.extract_strided_slice %164 {offsets = [0, 0], sizes = [1, 4], strides = [1, 1]} : vector<4x4xf32> to vector<1x4xf32>
    %168 = vector.broadcast %2 : vector<16x1xf32> to vector<16x4xf32>
    %169 = vector.broadcast %167 : vector<1x4xf32> to vector<16x4xf32>
    %170 = arith.mulf %168, %169 : vector<16x4xf32>
    %171 = vector.broadcast %166 : vector<1x4xf32> to vector<16x4xf32>
    %172 = arith.addf %171, %170 : vector<16x4xf32>
    %173 = vector.extract_strided_slice %164 {offsets = [1, 0], sizes = [1, 4], strides = [1, 1]} : vector<4x4xf32> to vector<1x4xf32>
    %174 = vector.broadcast %3 : vector<16x1xf32> to vector<16x4xf32>
    %175 = vector.broadcast %173 : vector<1x4xf32> to vector<16x4xf32>
    %176 = arith.mulf %174, %175 : vector<16x4xf32>
    %177 = arith.addf %172, %176 : vector<16x4xf32>
    %178 = vector.extract_strided_slice %164 {offsets = [2, 0], sizes = [1, 4], strides = [1, 1]} : vector<4x4xf32> to vector<1x4xf32>
    %179 = vector.broadcast %4 : vector<16x1xf32> to vector<16x4xf32>
    %180 = vector.broadcast %178 : vector<1x4xf32> to vector<16x4xf32>
    %181 = arith.mulf %179, %180 : vector<16x4xf32>
    %182 = arith.addf %177, %181 : vector<16x4xf32>
    %183 = vector.extract_strided_slice %164 {offsets = [3, 0], sizes = [1, 4], strides = [1, 1]} : vector<4x4xf32> to vector<1x4xf32>
    %184 = vector.broadcast %5 : vector<16x1xf32> to vector<16x4xf32>
    %185 = vector.broadcast %183 : vector<1x4xf32> to vector<16x4xf32>
    %186 = arith.mulf %184, %185 : vector<16x4xf32>
    %187 = arith.addf %182, %186 : vector<16x4xf32>
    %c7 = arith.constant 7 : index
    %c0_37 = arith.constant 0 : index
    %c0_38 = arith.constant 0 : index
    %188 = vector.load %arg2[%c7, %c0_37, %c0_38] : memref<8x4x4xbf16, #tpu.memory_space<vmem>>, vector<1x4x4xbf16>
    %189 = vector.shape_cast %188 : vector<1x4x4xbf16> to vector<4x4xbf16>
    %190 = arith.extf %189 : vector<4x4xbf16> to vector<4x4xf32>
    %c7_39 = arith.constant 7 : index
    %c0_40 = arith.constant 0 : index
    %c0_41 = arith.constant 0 : index
    %191 = vector.load %arg3[%c7_39, %c0_40, %c0_41] : memref<8x1x4xf32, #tpu.memory_space<vmem>>, vector<1x1x4xf32>
    %192 = vector.shape_cast %191 : vector<1x1x4xf32> to vector<1x4xf32>
    %193 = vector.extract_strided_slice %190 {offsets = [0, 0], sizes = [1, 4], strides = [1, 1]} : vector<4x4xf32> to vector<1x4xf32>
    %194 = vector.broadcast %2 : vector<16x1xf32> to vector<16x4xf32>
    %195 = vector.broadcast %193 : vector<1x4xf32> to vector<16x4xf32>
    %196 = arith.mulf %194, %195 : vector<16x4xf32>
    %197 = vector.broadcast %192 : vector<1x4xf32> to vector<16x4xf32>
    %198 = arith.addf %197, %196 : vector<16x4xf32>
    %199 = vector.extract_strided_slice %190 {offsets = [1, 0], sizes = [1, 4], strides = [1, 1]} : vector<4x4xf32> to vector<1x4xf32>
    %200 = vector.broadcast %3 : vector<16x1xf32> to vector<16x4xf32>
    %201 = vector.broadcast %199 : vector<1x4xf32> to vector<16x4xf32>
    %202 = arith.mulf %200, %201 : vector<16x4xf32>
    %203 = arith.addf %198, %202 : vector<16x4xf32>
    %204 = vector.extract_strided_slice %190 {offsets = [2, 0], sizes = [1, 4], strides = [1, 1]} : vector<4x4xf32> to vector<1x4xf32>
    %205 = vector.broadcast %4 : vector<16x1xf32> to vector<16x4xf32>
    %206 = vector.broadcast %204 : vector<1x4xf32> to vector<16x4xf32>
    %207 = arith.mulf %205, %206 : vector<16x4xf32>
    %208 = arith.addf %203, %207 : vector<16x4xf32>
    %209 = vector.extract_strided_slice %190 {offsets = [3, 0], sizes = [1, 4], strides = [1, 1]} : vector<4x4xf32> to vector<1x4xf32>
    %210 = vector.broadcast %5 : vector<16x1xf32> to vector<16x4xf32>
    %211 = vector.broadcast %209 : vector<1x4xf32> to vector<16x4xf32>
    %212 = arith.mulf %210, %211 : vector<16x4xf32>
    %213 = arith.addf %208, %212 : vector<16x4xf32>
    %c0_42 = arith.constant 0 : index
    %c0_43 = arith.constant 0 : index
    %214 = vector.load %arg4[%c0_42, %c0_43] : memref<8x4xbf16, #tpu.memory_space<vmem>>, vector<8x4xbf16>
    %215 = arith.extf %214 : vector<8x4xbf16> to vector<8x4xf32>
    %c0_44 = arith.constant 0 : index
    %c0_45 = arith.constant 0 : index
    %216 = vector.load %arg5[%c0_44, %c0_45] : memref<1x4xf32, #tpu.memory_space<vmem>>, vector<1x4xf32>
    %217 = arith.negf %31 : vector<16x4xf32>
    %218 = math.exp %217 : vector<16x4xf32>
    %cst = arith.constant 1.000000e+00 : f32
    %219 = vector.broadcast %cst : f32 to vector<16x4xf32>
    %220 = arith.addf %219, %218 : vector<16x4xf32>
    %221 = arith.divf %219, %220 : vector<16x4xf32>
    %222 = arith.negf %57 : vector<16x4xf32>
    %223 = math.exp %222 : vector<16x4xf32>
    %cst_46 = arith.constant 1.000000e+00 : f32
    %224 = vector.broadcast %cst_46 : f32 to vector<16x4xf32>
    %225 = arith.addf %224, %223 : vector<16x4xf32>
    %226 = arith.divf %224, %225 : vector<16x4xf32>
    %227 = arith.negf %83 : vector<16x4xf32>
    %228 = math.exp %227 : vector<16x4xf32>
    %cst_47 = arith.constant 1.000000e+00 : f32
    %229 = vector.broadcast %cst_47 : f32 to vector<16x4xf32>
    %230 = arith.addf %229, %228 : vector<16x4xf32>
    %231 = arith.divf %229, %230 : vector<16x4xf32>
    %232 = arith.negf %109 : vector<16x4xf32>
    %233 = math.exp %232 : vector<16x4xf32>
    %cst_48 = arith.constant 1.000000e+00 : f32
    %234 = vector.broadcast %cst_48 : f32 to vector<16x4xf32>
    %235 = arith.addf %234, %233 : vector<16x4xf32>
    %236 = arith.divf %234, %235 : vector<16x4xf32>
    %237 = arith.negf %135 : vector<16x4xf32>
    %238 = math.exp %237 : vector<16x4xf32>
    %cst_49 = arith.constant 1.000000e+00 : f32
    %239 = vector.broadcast %cst_49 : f32 to vector<16x4xf32>
    %240 = arith.addf %239, %238 : vector<16x4xf32>
    %241 = arith.divf %239, %240 : vector<16x4xf32>
    %242 = arith.negf %161 : vector<16x4xf32>
    %243 = math.exp %242 : vector<16x4xf32>
    %cst_50 = arith.constant 1.000000e+00 : f32
    %244 = vector.broadcast %cst_50 : f32 to vector<16x4xf32>
    %245 = arith.addf %244, %243 : vector<16x4xf32>
    %246 = arith.divf %244, %245 : vector<16x4xf32>
    %247 = arith.negf %187 : vector<16x4xf32>
    %248 = math.exp %247 : vector<16x4xf32>
    %cst_51 = arith.constant 1.000000e+00 : f32
    %249 = vector.broadcast %cst_51 : f32 to vector<16x4xf32>
    %250 = arith.addf %249, %248 : vector<16x4xf32>
    %251 = arith.divf %249, %250 : vector<16x4xf32>
    %252 = arith.negf %213 : vector<16x4xf32>
    %253 = math.exp %252 : vector<16x4xf32>
    %cst_52 = arith.constant 1.000000e+00 : f32
    %254 = vector.broadcast %cst_52 : f32 to vector<16x4xf32>
    %255 = arith.addf %254, %253 : vector<16x4xf32>
    %256 = arith.divf %254, %255 : vector<16x4xf32>
    %257 = vector.extract_strided_slice %215 {offsets = [0, 0], sizes = [1, 4], strides = [1, 1]} : vector<8x4xf32> to vector<1x4xf32>
    %258 = vector.broadcast %257 : vector<1x4xf32> to vector<16x4xf32>
    %259 = arith.mulf %221, %258 : vector<16x4xf32>
    %260 = vector.broadcast %216 : vector<1x4xf32> to vector<16x4xf32>
    %261 = arith.addf %260, %259 : vector<16x4xf32>
    %262 = vector.extract_strided_slice %215 {offsets = [1, 0], sizes = [1, 4], strides = [1, 1]} : vector<8x4xf32> to vector<1x4xf32>
    %263 = vector.broadcast %262 : vector<1x4xf32> to vector<16x4xf32>
    %264 = arith.mulf %226, %263 : vector<16x4xf32>
    %265 = arith.addf %261, %264 : vector<16x4xf32>
    %266 = vector.extract_strided_slice %215 {offsets = [2, 0], sizes = [1, 4], strides = [1, 1]} : vector<8x4xf32> to vector<1x4xf32>
    %267 = vector.broadcast %266 : vector<1x4xf32> to vector<16x4xf32>
    %268 = arith.mulf %231, %267 : vector<16x4xf32>
    %269 = arith.addf %265, %268 : vector<16x4xf32>
    %270 = vector.extract_strided_slice %215 {offsets = [3, 0], sizes = [1, 4], strides = [1, 1]} : vector<8x4xf32> to vector<1x4xf32>
    %271 = vector.broadcast %270 : vector<1x4xf32> to vector<16x4xf32>
    %272 = arith.mulf %236, %271 : vector<16x4xf32>
    %273 = arith.addf %269, %272 : vector<16x4xf32>
    %274 = vector.extract_strided_slice %215 {offsets = [4, 0], sizes = [1, 4], strides = [1, 1]} : vector<8x4xf32> to vector<1x4xf32>
    %275 = vector.broadcast %274 : vector<1x4xf32> to vector<16x4xf32>
    %276 = arith.mulf %241, %275 : vector<16x4xf32>
    %277 = arith.addf %273, %276 : vector<16x4xf32>
    %278 = vector.extract_strided_slice %215 {offsets = [5, 0], sizes = [1, 4], strides = [1, 1]} : vector<8x4xf32> to vector<1x4xf32>
    %279 = vector.broadcast %278 : vector<1x4xf32> to vector<16x4xf32>
    %280 = arith.mulf %246, %279 : vector<16x4xf32>
    %281 = arith.addf %277, %280 : vector<16x4xf32>
    %282 = vector.extract_strided_slice %215 {offsets = [6, 0], sizes = [1, 4], strides = [1, 1]} : vector<8x4xf32> to vector<1x4xf32>
    %283 = vector.broadcast %282 : vector<1x4xf32> to vector<16x4xf32>
    %284 = arith.mulf %251, %283 : vector<16x4xf32>
    %285 = arith.addf %281, %284 : vector<16x4xf32>
    %286 = vector.extract_strided_slice %215 {offsets = [7, 0], sizes = [1, 4], strides = [1, 1]} : vector<8x4xf32> to vector<1x4xf32>
    %287 = vector.broadcast %286 : vector<1x4xf32> to vector<16x4xf32>
    %288 = arith.mulf %256, %287 : vector<16x4xf32>
    %289 = arith.addf %285, %288 : vector<16x4xf32>
    %c0_53 = arith.constant 0 : index
    %c0_54 = arith.constant 0 : index
    %290 = vector.load %arg6[%c0_53, %c0_54] : memref<16x4xf32, #tpu.memory_space<vmem>>, vector<16x4xf32>
    tpu.vector_store %arg6[%c0_53, %c0_54], %289 {strides = array<i32>} : memref<16x4xf32, #tpu.memory_space<vmem>>, vector<16x4xf32>,
    return
  }
  func.func @transform_0(%arg0: i32) -> (i32, i32) {
    %c0_i32 = arith.constant 0 : i32
    %c0_i32_0 = arith.constant 0 : i32
    return %arg0, %c0_i32 : i32, i32
  }
  func.func @transform_1(%arg0: i32) -> (i32, i32, i32) {
    %c0_i32 = arith.constant 0 : i32
    %c0_i32_0 = arith.constant 0 : i32
    %c0_i32_1 = arith.constant 0 : i32
    %c0_i32_2 = arith.constant 0 : i32
    return %c0_i32, %c0_i32_0, %c0_i32_1 : i32, i32, i32
  }
  func.func @transform_2(%arg0: i32) -> (i32, i32, i32) {
    %c0_i32 = arith.constant 0 : i32
    %c0_i32_0 = arith.constant 0 : i32
    %c0_i32_1 = arith.constant 0 : i32
    %c0_i32_2 = arith.constant 0 : i32
    return %c0_i32, %c0_i32_0, %c0_i32_1 : i32, i32, i32
  }
  func.func @transform_3(%arg0: i32) -> (i32, i32) {
    %c0_i32 = arith.constant 0 : i32
    %c0_i32_0 = arith.constant 0 : i32
    %c0_i32_1 = arith.constant 0 : i32
    return %c0_i32, %c0_i32_0 : i32, i32
  }
  func.func @transform_4(%arg0: i32) -> (i32, i32) {
    %c0_i32 = arith.constant 0 : i32
    %c0_i32_0 = arith.constant 0 : i32
    %c0_i32_1 = arith.constant 0 : i32
    return %c0_i32, %c0_i32_0 : i32, i32
  }
  func.func @transform_5(%arg0: i32) -> (i32, i32) {
    %c0_i32 = arith.constant 0 : i32
    %c0_i32_0 = arith.constant 0 : i32
    return %arg0, %c0_i32 : i32, i32
  }
}

</mosaic_0001>

<bundles_post_ra>
// kernel: tpu_custom_call.1
= control target key start
LH: loop header
LB: loop body
LE: loop exit
PB: predicated region body
PF: predicated region fallthrough
CT: control target
= control target key end

     0   :  { %v712_v0 = vmov 0   ;;  %v713_v2 = vmov 2   ;;  %v714_v6 = vmov 1   ;;  %v715_v7 = vmov 3   ;;  %s1064_s0 = inlined_call_operand.vmem [shape: bf16[16,4], index: 0, kind: input, shape index: {}]   ;;  %s1065_s1 = inlined_call_operand.vmem [shape: bf16[8,4,4], index: 1, kind: input, shape index: {}]   ;;  %s1066_s2 = inlined_call_operand.vmem [shape: f32[8,1,4], index: 2, kind: input, shape index: {}]   ;;  %s1067_s3 = inlined_call_operand.vmem [shape: bf16[8,4], index: 3, kind: input, shape index: {}]   ;;  %s1068_s4 = inlined_call_operand.vmem [shape: f32[1,4], index: 4, kind: input, shape index: {}]   ;;  %s1069_s5 = inlined_call_operand.vmem [shape: f32[16,4], index: 5, kind: output, shape index: {}]  }
   0x1   :  { %623 = vset.pattern.permute.xlu0 %v712_v0  ;;  %v616_v1 = vld [vmem:[%s1064_s0] sm:$0xff]   ;;  %635 = vset.pattern.permute.xlu1 %v713_v2  ;;  %v37_v8 = vlaneseq  ;;  %v586_v14 = vld [vmem:[%s1065_s1 + $0x8] sm:$0x3]  ;;  %v589_v15 = vld [vmem:[%s1065_s1 + $0xa] sm:$0x3]  ;;  %vm569_vm0 = vcmask 31744  }
   0x2   :  { %v617_v3 = vunpack.c.l.bf16 %v616_v1  ;;  %v618_v4 = vunpack.c.h.bf16 %v616_v1  ;;  %v24_v10 = vld [vmem:[%s1065_s1] sm:$0x3]  ;;  %v577_v11 = vld [vmem:[%s1065_s1 + $0x2] sm:$0x3]  ;;  %v580_v12 = vld [vmem:[%s1065_s1 + $0x4] sm:$0x3]  ;;  %v230_v23 = vunpack.c.l.bf16 %v586_v14  ;;  %v273_v24 = vunpack.c.l.bf16 %v589_v15 }
   0x3   :  { %v749_v9 = vshrl.u32 %v37_v8, 7  ;;  %v583_v13 = vld [vmem:[%s1065_s1 + $0x6] sm:$0x3]  ;;  %v592_v16 = vld [vmem:[%s1065_s1 + $0xc] sm:$0x3]  ;;  %v25_v18 = vunpack.c.l.bf16 %v24_v10  ;;  %v101_v20 = vunpack.c.l.bf16 %v577_v11  ;;  %v144_v21 = vunpack.c.l.bf16 %v580_v12 }
   0x4   :  { %v624_v5 = vpack.i.bf16 %v618_v4, %v617_v3  ;;  %v595_v17 = vld [vmem:[%s1065_s1 + $0xe] sm:$0x3]  ;;  %v187_v22 = vunpack.c.l.bf16 %v583_v13  ;;  %v316_v25 = vunpack.c.l.bf16 %v592_v16  ;;  %v585_v13 = vld [vmem:[%s1066_s2 + $0x3] ss:$0 sm:$0xff]  ;;  %v588_v14 = vld [vmem:[%s1066_s2 + $0x4] ss:$0 sm:$0xff] }
   0x5   :  { %1082 = vst [vmem:[#allocation2_spill] sm:$0xff] %v749_v9  ;;  %v776_v19 = vsub.s32 0, %v749_v9  ;;  %v778_v26 = vunpack.c.l.bf16 %v595_v17  ;;  %v781_v27 = vsub.s32 2, %v749_v9  ;;  %v785_v29 = vsub.s32 1, %v749_v9  ;;  %v591_v15 = vld [vmem:[%s1066_s2 + $0x5] ss:$0 sm:$0xff] }
   0x6   :  { %625 = vperm.xlu0 %623, %v624_v5   ;;  %637 = vperm.xlu1 %635, %v624_v5   ;;  %v812_v42 = vsub.s32 3, %v749_v9 }
   0x7   :  { %1083 = vst [vmem:[#allocation3_spill] sm:$0xff] %v776_v19  ;;  %1084 = vst [vmem:[#allocation4_spill] sm:$0xff] %v778_v26  ;;  %v40_v28 = vrot.slane %v25_v18, %v776_v19  ;;  %v107_v30 = vrot.slane %v101_v20, %v776_v19  ;;  %v150_v31 = vrot.slane %v144_v21, %v776_v19 }
   0x8   :  { %1085 = vst [vmem:[#allocation5_spill] sm:$0xff] %v785_v29  ;;  %v193_v32 = vrot.slane %v187_v22, %v776_v19  ;;  %v236_v33 = vrot.slane %v230_v23, %v776_v19  ;;  %v279_v34 = vrot.slane %v273_v24, %v776_v19  ;;  %v793_v35 = vrot.slane %v316_v25, %v776_v19 }
   0x9   :  { %v797_v36 = vrot.slane %v778_v26, %v776_v19  ;;  %v800_v38 = vrot.slane %v25_v18, %v781_v27  ;;  %v803_v39 = vrot.slane %v101_v20, %v781_v27  ;;  %v806_v40 = vrot.slane %v144_v21, %v781_v27  ;;  %1086 = vst [vmem:[#allocation6_spill] sm:$0xff] %v812_v42 }
   0xa   :  { %629 = vset.pattern.permute.xlu0 %v714_v6  ;;  %641 = vset.pattern.permute.xlu1 %v715_v7  ;;  %v809_v41 = vrot.slane %v187_v22, %v781_v27  ;;  %v815_v43 = vrot.slane %v230_v23, %v781_v27  ;;  %v818_v44 = vrot.slane %v273_v24, %v781_v27  ;;  %v579_v6 = vld [vmem:[%s1066_s2 + $0x1] ss:$0 sm:$0xff] }
   0xb   :  { %631 = vperm.xlu0 %629, %v624_v5   ;;  %643 = vperm.xlu1 %641, %v624_v5   ;;  %v821_v45 = vrot.slane %v316_v25, %v781_v27  ;;  %v62_v46 = vrot.slane %v25_v18, %v785_v29  ;;  %v827_v48 = vrot.slane %v101_v20, %v785_v29  ;;  %v576_v5 = vld [vmem:[%s1066_s2] ss:$0 sm:$0xff] }
   0xc   :  { %v830_v49 = vrot.slane %v144_v21, %v785_v29  ;;  %v833_v50 = vrot.slane %v187_v22, %v785_v29  ;;  %v838_v53 = vrot.slane %v230_v23, %v785_v29  ;;  %v841_v54 = vrot.slane %v273_v24, %v785_v29 }
   0xd   :  { %v844_v55 = vrot.slane %v316_v25, %v785_v29  ;;  %v848_v56 = vrot.slane %v778_v26, %v785_v29  ;;  %v851_v57 = vrot.slane %v25_v18, %v812_v42  ;;  %v854_v58 = vrot.slane %v101_v20, %v812_v42 }
   0xe   :  { %v857_v59 = vrot.slane %v144_v21, %v812_v42  ;;  %v860_v60 = vrot.slane %v187_v22, %v812_v42  ;;  %v863_v61 = vrot.slane %v230_v23, %v812_v42  ;;  %v866_v62 = vrot.slane %v273_v24, %v812_v42 }
   0xf   :  { %647 = vset.pattern.permute.xlu0 %v715_v7  ;;  %1087 = vst [vmem:[#allocation7_spill] sm:$0xff] %v848_v56  ;;  %v869_v63 = vrot.slane %v316_v25, %v812_v42  ;;  %v582_v7 = vld [vmem:[%s1066_s2 + $0x2] ss:$0 sm:$0xff]  ;;  %v912_v25 = vld [vmem:[%s1066_s2 + $0x6] ss:$0 sm:$0xff] }
  0x10   :  { %1089 = vst [vmem:[#allocation9_spill] sm:$0xff] %v912_v25 }
  0x85   :  { %v626_v37 = vpop.permute.xlu0 %625  ;;  %v638_v52 = vpop.permute.xlu1 %637 }
  0x86   :  { %v824_v47 = vunpack.i.h.bf16 %v626_v37  ;;  %v835_v51 = vunpack.i.l.bf16 %v626_v37  ;;  %v874_v3 = vunpack.i.h.bf16 %v638_v52  ;;  %v905_v23 = vunpack.i.l.bf16 %v638_v52 }
  0x88   :  { %v42_v0 = vmul.f32 %v824_v47, %v40_v28  ;;  %v109_v1 = vmul.f32 %v824_v47, %v107_v30  ;;  %v152_v2 = vmul.f32 %v824_v47, %v150_v31  ;;  %1088 = vst [vmem:[#allocation8_spill] sm:$0xff] %v874_v3  ;;  %v195_v8 = vmul.f32 %v824_v47, %v193_v32 }
  0x89   :  { %v238_v10 = vmul.f32 %v824_v47, %v236_v33  ;;  %v281_v11 = vmul.f32 %v824_v47, %v279_v34  ;;  %v41_v12 = vmul.f32 %v835_v51, %v40_v28  ;;  %v108_v16 = vmul.f32 %v835_v51, %v107_v30 }
  0x8a   :  { %v632_v4 = vpop.permute.xlu0 %631  ;;  %v151_v17 = vmul.f32 %v835_v51, %v150_v31  ;;  %v194_v18 = vmul.f32 %v835_v51, %v193_v32  ;;  %v237_v20 = vmul.f32 %v835_v51, %v236_v33  ;;  %v280_v21 = vmul.f32 %v835_v51, %v279_v34 }
  0x8b   :  { %v323_v22 = vmul.f32 %v835_v51, %v793_v35  ;;  %v907_v24 = vunpack.i.l.bf16 %v632_v4  ;;  %v50_v28 = vadd.f32 %v576_v5, %v42_v0  ;;  %v117_v30 = vadd.f32 %v579_v6, %v109_v1 }
  0x8c   :  { %v160_v31 = vadd.f32 %v582_v7, %v152_v2  ;;  %v914_v32 = vunpack.i.h.bf16 %v632_v4  ;;  %v203_v33 = vadd.f32 %v585_v13, %v195_v8  ;;  %v246_v37 = vadd.f32 %v588_v14, %v238_v10 }
  0x8d   :  { %v916_v34 = vadd.f32 %v591_v15, %v281_v11  ;;  %v49_v9 = vadd.f32 %v576_v5, %v41_v12  ;;  %v116_v29 = vadd.f32 %v579_v6, %v108_v16  ;;  %v159_v52 = vadd.f32 %v582_v7, %v151_v17  ;;  %v644_v7 = vpop.permute.xlu1 %643 }
  0x8e   :  { %v202_v19 = vadd.f32 %v585_v13, %v194_v18  ;;  %v245_v42 = vadd.f32 %v588_v14, %v237_v20  ;;  %v288_v56 = vadd.f32 %v591_v15, %v280_v21  ;;  %v919_v26 = vadd.f32 %v912_v25, %v323_v22 }
  0x8f   :  { %v80_v0 = vmul.f32 %v874_v3, %v800_v38  ;;  %v63_v1 = vmul.f32 %v907_v24, %v62_v46  ;;  %v131_v2 = vmul.f32 %v874_v3, %v803_v39  ;;  %v174_v4 = vmul.f32 %v874_v3, %v806_v40 }
  0x90   :  { %v217_v5 = vmul.f32 %v874_v3, %v809_v41  ;;  %v64_v6 = vmul.f32 %v914_v32, %v62_v46  ;;  %v260_v8 = vmul.f32 %v874_v3, %v815_v43  ;;  %v935_v10 = vmul.f32 %v874_v3, %v818_v44 }
  0x91   :  { %v123_v11 = vmul.f32 %v914_v32, %v827_v48  ;;  %v122_v12 = vmul.f32 %v907_v24, %v827_v48  ;;  %v79_v13 = vmul.f32 %v905_v23, %v800_v38  ;;  %v130_v46 = vmul.f32 %v905_v23, %v803_v39 }
  0x92   :  { %v173_v14 = vmul.f32 %v905_v23, %v806_v40  ;;  %v165_v15 = vmul.f32 %v907_v24, %v830_v49  ;;  %v166_v16 = vmul.f32 %v914_v32, %v830_v49  ;;  %v209_v17 = vmul.f32 %v914_v32, %v833_v50 }
  0x93   :  { %v65_v18 = vadd.f32 %v63_v1, %v49_v9  ;;  %v953_v48 = vunpack.i.l.bf16 %v644_v7  ;;  %v216_v38 = vmul.f32 %v905_v23, %v809_v41  ;;  %v66_v20 = vadd.f32 %v64_v6, %v50_v28 }
  0x94   :  { %v208_v39 = vmul.f32 %v907_v24, %v833_v50  ;;  %v959_v40 = vunpack.i.h.bf16 %v644_v7  ;;  %v259_v21 = vmul.f32 %v905_v23, %v815_v43  ;;  %v302_v49 = vmul.f32 %v905_v23, %v818_v44 }
  0x95   :  { %v124_v22 = vadd.f32 %v122_v12, %v116_v29  ;;  %v125_v3 = vadd.f32 %v123_v11, %v117_v30  ;;  %v252_v9 = vmul.f32 %v914_v32, %v838_v53  ;;  %v295_v41 = vmul.f32 %v914_v32, %v841_v54 }
  0x96   :  { %v167_v28 = vadd.f32 %v165_v15, %v159_v52  ;;  %v251_v50 = vmul.f32 %v907_v24, %v838_v53  ;;  %v168_v1 = vadd.f32 %v166_v16, %v160_v31  ;;  %v211_v6 = vadd.f32 %v209_v17, %v203_v33 }
  0x97   :  { %v81_v7 = vadd.f32 %v79_v13, %v65_v18  ;;  %v95_v43 = vmul.f32 %v953_v48, %v851_v57  ;;  %v210_v25 = vadd.f32 %v208_v39, %v202_v19  ;;  %v294_v29 = vmul.f32 %v907_v24, %v841_v54 }
  0x98   :  { %v96_v44 = vmul.f32 %v959_v40, %v851_v57  ;;  %v82_v30 = vadd.f32 %v80_v0, %v66_v20  ;;  %v139_v52 = vmul.f32 %v959_v40, %v854_v58  ;;  %v132_v11 = vadd.f32 %v130_v46, %v124_v22 }
  0x99   :  { %v133_v12 = vadd.f32 %v131_v2, %v125_v3  ;;  %v138_v53 = vmul.f32 %v953_v48, %v854_v58  ;;  %v253_v31 = vadd.f32 %v251_v50, %v245_v42  ;;  %v254_v33 = vadd.f32 %v252_v9, %v246_v37 }
  0x9a   :  { %v175_v13 = vadd.f32 %v173_v14, %v167_v28  ;;  %v181_v19 = vmul.f32 %v953_v48, %v857_v59  ;;  %v182_v54 = vmul.f32 %v959_v40, %v857_v59  ;;  %v225_v57 = vmul.f32 %v959_v40, %v860_v60 }
  0x9b   :  { %v97_v0 = vadd.f32 %v95_v43, %v81_v7  ;;  %v176_v15 = vadd.f32 %v174_v4, %v168_v1  ;;  %v98_v16 = vadd.f32 %v96_v44, %v82_v30  ;;  %v218_v46 = vadd.f32 %v216_v38, %v210_v25 }
  0x9c   :  { %v219_v3 = vadd.f32 %v217_v5, %v211_v6  ;;  %v224_v58 = vmul.f32 %v953_v48, %v860_v60  ;;  %v296_v42 = vadd.f32 %v294_v29, %v288_v56  ;;  %v297_v37 = vadd.f32 %v295_v41, %v916_v34 }
  0x9d   :  { %v140_v2 = vadd.f32 %v138_v53, %v132_v11  ;;  %v141_v14 = vadd.f32 %v139_v52, %v133_v12  ;;  %v337_v17 = vmul.f32 %v907_v24, %v844_v55  ;;  %v183_v59 = vadd.f32 %v181_v19, %v175_v13  ;;  %v597_v11 = vld [vmem:[%s1066_s2 + $0x7] ss:$0 sm:$0xff]  ;;  %v1090_v53 = vld [vmem:[#allocation4_spill] sm:$0xff]  ;;  %v1092_v13 = vld [vmem:[#allocation7_spill] sm:$0xff] }
  0x9e   :  { %v261_v18 = vadd.f32 %v259_v21, %v253_v31  ;;  %v267_v20 = vmul.f32 %v953_v48, %v863_v61  ;;  %v268_v25 = vmul.f32 %v959_v40, %v863_v61  ;;  %v311_v4 = vmul.f32 %v959_v40, %v866_v62 }
  0x9f   :  { %v184_v60 = vadd.f32 %v182_v54, %v176_v15  ;;  %v262_v56 = vadd.f32 %v260_v8, %v254_v33  ;;  %v226_v5 = vadd.f32 %v224_v58, %v218_v46  ;;  %v227_v34 = vadd.f32 %v225_v57, %v219_v3  ;;  %v1093_v3 = vld [vmem:[#allocation8_spill] sm:$0xff] }
  0xa0   :  { %v598_v38 = vmul.f32 -1.442695, %v97_v0  ;;  %v599_v39 = vmul.f32 -1.442695, %v98_v16  ;;  %v304_v22 = vadd.f32 %v302_v49, %v296_v42  ;;  %v310_v9 = vmul.f32 %v953_v48, %v866_v62  ;;  %v1094_v42 = vld [vmem:[#allocation6_spill] sm:$0xff] }
  0xa1   :  { %v600_v21 = vmul.f32 -1.442695, %v140_v2  ;;  %v601_v41 = vmul.f32 -1.442695, %v141_v14  ;;  %v269_v28 = vadd.f32 %v267_v20, %v261_v18  ;;  %v305_v50 = vadd.f32 %v935_v10, %v297_v37 }
  0xa2   :  { %648 = vpow2.f32 %v598_v38  ;;  %v602_v61 = vmul.f32 -1.442695, %v183_v59  ;;  %v339_v1 = vadd.f32 %v337_v17, %v919_v26  ;;  %v270_v6 = vadd.f32 %v268_v25, %v262_v56 }
  0xa3   :  { %650 = vpow2.f32 %v599_v39  ;;  %v603_v8 = vmul.f32 -1.442695, %v184_v60  ;;  %v324_v7 = vmul.f32 %v824_v47, %v793_v35  ;;  %v366_v49 = vmul.f32 %v835_v51, %v797_v36 }
  0xa4   :  { %652 = vpow2.f32 %v600_v21  ;;  %v604_v62 = vmul.f32 -1.442695, %v226_v5  ;;  %v345_v43 = vmul.f32 %v905_v23, %v821_v45  ;;  %v312_v29 = vadd.f32 %v310_v9, %v304_v22 }
  0xa5   :  { %654 = vpow2.f32 %v601_v41  ;;  %v605_v10 = vmul.f32 -1.442695, %v227_v34  ;;  %v338_v26 = vmul.f32 %v914_v32, %v844_v55  ;;  %v313_v44 = vadd.f32 %v311_v4, %v305_v50  ;;  %v1091_v55 = vld [vmem:[#allocation9_spill] sm:$0xff] }
  0xa6   :  { %656 = vpow2.f32 %v602_v61  ;;  %v606_v30 = vmul.f32 -1.442695, %v269_v28  ;;  %v347_v52 = vadd.f32 %v345_v43, %v339_v1  ;;  %v353_v35 = vmul.f32 %v953_v48, %v869_v63  ;;  %v1095_v43 = vld [vmem:[#allocation3_spill] sm:$0xff] }
  0xa7   :  { %658 = vpow2.f32 %v603_v8  ;;  %v607_v51 = vmul.f32 -1.442695, %v270_v6  ;;  %v367_v12 = vmul.f32 %v824_v47, %v797_v36  ;;  %v387_v31 = vrot.slane %v1090_v53, %v781_v27 }
  0xa8   :  { %660 = vpow2.f32 %v604_v62  ;;  %v332_v33 = vadd.f32 %v1091_v55, %v324_v7  ;;  %v380_v19 = vmul.f32 %v907_v24, %v1092_v13  ;;  %v608_v54 = vmul.f32 -1.442695, %v312_v29 }
  0xa9   :  { %662 = vpow2.f32 %v605_v10  ;;  %v381_v57 = vmul.f32 %v914_v32, %v1092_v13  ;;  %v609_v0 = vmul.f32 -1.442695, %v313_v44  ;;  %v374_v15 = vadd.f32 %v597_v11, %v366_v49  ;;  %v400_v32 = vld [vmem:[%s1067_s3] sm:$0xf] }
  0xaa   :  { %664 = vpow2.f32 %v606_v30  ;;  %v340_v16 = vadd.f32 %v338_v26, %v332_v33  ;;  %v355_v46 = vadd.f32 %v353_v35, %v347_v52  ;;  %v375_v47 = vadd.f32 %v597_v11, %v367_v12  ;;  %v614_v35 = vld [vmem:[%s1068_s4] ss:$0 sm:$0xff] }
  0xab   :  { %666 = vpow2.f32 %v607_v51  ;;  %v346_v58 = vmul.f32 %v1093_v3, %v821_v45  ;;  %v395_v37 = vrot.slane %v1090_v53, %v1094_v42  ;;  %v388_v2 = vmul.f32 %v905_v23, %v387_v31  ;;  %v1096_v51 = vld [vmem:[#allocation5_spill] sm:$0xff] }
  0xac   :  { %v649_v36 = vpop.eup %648  ;;  %v382_v14 = vadd.f32 %v380_v19, %v374_v15  ;;  %668 = vpow2.f32 %v608_v54  ;;  %v383_v18 = vadd.f32 %v381_v57, %v375_v47  ;;  %v354_v20 = vmul.f32 %v959_v40, %v869_v63 }
  0xad   :  { %v651_v24 = vpop.eup %650  ;;  %v409_v17 = vadd.f32 1.0, %v649_v36  ;;  %670 = vpow2.f32 %v609_v0  ;;  %v348_v4 = vadd.f32 %v346_v58, %v340_v16  ;;  %v610_v56 = vmul.f32 -1.442695, %v355_v46 }
  0xae   :  { %v653_v59 = vpop.eup %652  ;;  %v410_v25 = vadd.f32 1.0, %v651_v24  ;;  %v389_v5 = vmul.f32 %v1093_v3, %v387_v31  ;;  %v1035_v34 = vunpack.c.l.bf16 %v400_v32  ;;  %v390_v22 = vadd.f32 %v388_v2, %v382_v14  ;;  %v1097_v14 = vld [vmem:[#allocation2_spill] sm:$0xff] }
  0xaf   :  { %v655_v45 = vpop.eup %654  ;;  %672 = vrcp.f32 %v409_v17  ;;  %v421_v60 = vadd.f32 1.0, %v653_v59  ;;  %v396_v9 = vmul.f32 %v953_v48, %v395_v37  ;;  %v397_v41 = vmul.f32 %v959_v40, %v395_v37 }
  0xb0   :  { %v657_v23 = vpop.eup %656  ;;  %674 = vrcp.f32 %v410_v25  ;;  %v422_v38 = vadd.f32 1.0, %v655_v45  ;;  %v391_v28 = vadd.f32 %v389_v5, %v383_v18  ;;  %v356_v1 = vadd.f32 %v354_v20, %v348_v4 }
  0xb1   :  { %v659_v39 = vpop.eup %658  ;;  %676 = vrcp.f32 %v421_v60  ;;  %v433_v63 = vadd.f32 1.0, %v657_v23  ;;  %v398_v49 = vadd.f32 %v396_v9, %v390_v22  ;;  %v502_v48 = vrot.slane %v1035_v34, %v1095_v43 }
  0xb2   :  { %v661_v21 = vpop.eup %660  ;;  %678 = vrcp.f32 %v422_v38  ;;  %v434_v50 = vadd.f32 1.0, %v659_v39  ;;  %v399_v29 = vadd.f32 %v397_v41, %v391_v28  ;;  %v611_v40 = vmul.f32 -1.442695, %v356_v1 }
  0xb3   :  { %v663_v61 = vpop.eup %662  ;;  %680 = vpow2.f32 %v610_v56  ;;  %v445_v8 = vadd.f32 1.0, %v661_v21  ;;  %v516_v11 = vrot.slane %v1035_v34, %v1096_v51  ;;  %v612_v12 = vmul.f32 -1.442695, %v398_v49 }
  0xb4   :  { %v665_v6 = vpop.eup %664  ;;  %682 = vrcp.f32 %v433_v63  ;;  %v446_v62 = vadd.f32 1.0, %v663_v61  ;;  %v613_v31 = vmul.f32 -1.442695, %v399_v29  ;;  %v524_v15 = vrot.slane %v1035_v34, %v781_v27 }
  0xb5   :  { %v667_v7 = vpop.eup %666  ;;  %684 = vrcp.f32 %v434_v50  ;;  %v457_v10 = vadd.f32 1.0, %v665_v6  ;;  %v532_v2 = vrot.slane %v1035_v34, %v1094_v42  ;;  %v539_v32 = vsub.s32 4, %v1097_v14 }
  0xb6   :  { %v669_v26 = vpop.eup %668  ;;  %686 = vrcp.f32 %v445_v8  ;;  %v458_v30 = vadd.f32 1.0, %v667_v7  ;;  %v547_v56 = vsub.s32 5, %v1097_v14  ;;  %v555_v21 = vsub.s32 6, %v1097_v14 }
  0xb7   :  { %v671_v44 = vpop.eup %670  ;;  %688 = vrcp.f32 %v446_v62  ;;  %v469_v54 = vadd.f32 1.0, %v669_v26  ;;  %v540_v60 = vrot.slane %v1035_v34, %v539_v32  ;;  %v563_v43 = vsub.s32 7, %v1097_v14 }
  0xb8   :  { %690 = vrcp.f32 %v457_v10  ;;  %v470_v47 = vadd.f32 1.0, %v671_v44  ;;  %v548_v28 = vrot.slane %v1035_v34, %v547_v56  ;;  %v556_v62 = vrot.slane %v1035_v34, %v555_v21 }
  0xb9   :  { %v673_v52 = vpop.eup %672  ;;  %692 = vpow2.f32 %v611_v40  ;;  %v564_v44 = vrot.slane %v1035_v34, %v563_v43 }
  0xba   :  { %v675_v53 = vpop.eup %674  ;;  %v503_v55 = vmul.f32 %v673_v52, %v502_v48  ;;  %694 = vrcp.f32 %v458_v30 }
  0xbb   :  { %v677_v33 = vpop.eup %676  ;;  %v504_v13 = vmul.f32 %v675_v53, %v502_v48  ;;  %696 = vpow2.f32 %v612_v12 }
  0xbc   :  { %v679_v19 = vpop.eup %678  ;;  %v511_v57 = vadd.f32 %v614_v35, %v503_v55  ;;  %v517_v46 = vmul.f32 %v677_v33, %v516_v11  ;;  %698 = vpow2.f32 %v613_v31 }
  0xbd   :  { %v681_v0 = vpop.eup %680  ;;  %v512_v16 = vadd.f32 %v614_v35, %v504_v13  ;;  %v518_v3 = vmul.f32 %v679_v19, %v516_v11  ;;  %700 = vrcp.f32 %v469_v54 }
  0xbe   :  { %v683_v36 = vpop.eup %682  ;;  %v519_v58 = vadd.f32 %v517_v46, %v511_v57  ;;  %v481_v24 = vadd.f32 1.0, %v681_v0  ;;  %702 = vrcp.f32 %v470_v47 }
  0xbf   :  { %v685_v37 = vpop.eup %684  ;;  %v520_v17 = vadd.f32 %v518_v3, %v512_v16  ;;  %v525_v59 = vmul.f32 %v683_v36, %v524_v15 }
  0xc0   :  { %v687_v18 = vpop.eup %686  ;;  %v526_v20 = vmul.f32 %v685_v37, %v524_v15  ;;  %704 = vrcp.f32 %v481_v24 }
  0xc1   :  { %v689_v27 = vpop.eup %688  ;;  %v527_v25 = vadd.f32 %v525_v59, %v519_v58  ;;  %v533_v5 = vmul.f32 %v687_v18, %v532_v2 }
  0xc2   :  { %v691_v45 = vpop.eup %690  ;;  %v528_v23 = vadd.f32 %v526_v20, %v520_v17  ;;  %v534_v22 = vmul.f32 %v689_v27, %v532_v2 }
  0xc3   :  { %v693_v4 = vpop.eup %692  ;;  %v535_v9 = vadd.f32 %v533_v5, %v527_v25  ;;  %v541_v1 = vmul.f32 %v691_v45, %v540_v60 }
  0xc4   :  { %v695_v38 = vpop.eup %694  ;;  %v482_v42 = vadd.f32 1.0, %v693_v4  ;;  %v536_v61 = vadd.f32 %v534_v22, %v528_v23 }
  0xc5   :  { %v697_v39 = vpop.eup %696  ;;  %v542_v8 = vmul.f32 %v695_v38, %v540_v60  ;;  %v543_v7 = vadd.f32 %v541_v1, %v535_v9 }
  0xc6   :  { %v699_v63 = vpop.eup %698  ;;  %706 = vrcp.f32 %v482_v42  ;;  %v493_v41 = vadd.f32 1.0, %v697_v39 }
  0xc7   :  { %v494_v50 = vadd.f32 1.0, %v699_v63  ;;  %v701_v6 = vpop.eup %700  ;;  %v544_v48 = vadd.f32 %v542_v8, %v536_v61 }
  0xc8   :  { %708 = vrcp.f32 %v493_v41  ;;  %v703_v49 = vpop.eup %702  ;;  %v549_v29 = vmul.f32 %v701_v6, %v548_v28 }
  0xc9   :  { %710 = vrcp.f32 %v494_v50  ;;  %v550_v26 = vmul.f32 %v703_v49, %v548_v28 }
  0xca   :  { %v705_v10 = vpop.eup %704  ;;  %v551_v40 = vadd.f32 %v549_v29, %v543_v7 }
  0xcb   :  { %v552_v30 = vadd.f32 %v550_v26, %v544_v48  ;;  %v557_v52 = vmul.f32 %v705_v10, %v556_v62 }
  0xcd   :  { %v559_v11 = vadd.f32 %v557_v52, %v551_v40 }
  0xd0   :  { %v707_v35 = vpop.eup %706 }
  0xd1   :  { %v558_v51 = vmul.f32 %v707_v35, %v556_v62 }
  0xd2   :  { %v709_v12 = vpop.eup %708 }
  0xd3   :  { %v711_v53 = vpop.eup %710  ;;  %v560_v31 = vadd.f32 %v558_v51, %v552_v30  ;;  %v565_v55 = vmul.f32 %v709_v12, %v564_v44 }
  0xd4   :  { %v566_v33 = vmul.f32 %v711_v53, %v564_v44 }
  0xd5   :  { %v567_v13 = vadd.f32 %v565_v55, %v559_v11 }
  0xd6   :  { %v568_v19 = vadd.f32 %v566_v33, %v560_v31 }
  0xd7   :  { %570 = vst.msk [vmem:[%s1069_s5] sm:$0xff] %vm569_vm0, %v567_v13 }
  0xd8   :  { %571 = vst.msk [vmem:[%s1069_s5 + $0x8] sm:$0xff] %vm569_vm0, %v568_v19 }

</bundles_post_ra>
